<compile_context>
chip_gen: v7x
topology: tpu7x:2x2x1
jax: 0.10.0
libtpu: 0.0.40
codegen_flags: <defaults>
</compile_context>

<pallas_src>
import functools

import jax
import jax.numpy as jnp
from jax.experimental import pallas as pl
from jax.experimental.pallas import tpu as pltpu


def _round_up(n: int, m: int) -> int:
    return -(-n // m) * m


def _cgmm_kernel(x_ref,
                 w1_ref, b1_ref,
                 w2_ref, b2_ref,
                 wh_ref, bh_ref,
                 out_ref, *, k, kd):
    """One batch tile: feature MLP + packed (mixture|mean|std) head."""
    cdt = w1_ref.dtype                       # MXU compute dtype (f32 or bf16)

    # x arrives in its HBM storage dtype (f32); cast in-kernel.
    x = x_ref[...].astype(cdt)                                   # [TM, In]

    # feature MLP (lane-dense Hp-wide intermediates, f32 accumulation/math)
    h1 = jnp.tanh(
        jnp.dot(x, w1_ref[...], preferred_element_type=jnp.float32)
        + b1_ref[...])                                           # [TM, Hp] f32
    h2 = jnp.tanh(
        jnp.dot(h1.astype(cdt), w2_ref[...],
                preferred_element_type=jnp.float32)
        + b2_ref[...])                                           # [TM, Hp] f32

    # fused head: packed columns [mixture(k) | mean(kd) | std(kd) | pad]
    z = (jnp.dot(h2.astype(cdt), wh_ref[...],
                 preferred_element_type=jnp.float32)
         + bh_ref[...])                                          # [TM, Wp] f32

    col = jax.lax.broadcasted_iota(jnp.int32, z.shape, 1)
    is_mix = col < k
    is_mean = (col >= k) & (col < k + kd)
    is_std = (col >= k + kd) & (col < k + 2 * kd)

    # mixture softmax over the first k columns only (lane-masked, exact)
    zm = jnp.where(is_mix, z, -jnp.inf)
    m = jnp.max(zm, axis=-1, keepdims=True)
    e = jnp.exp(zm - m)                      # exp(-inf) = 0 on non-mix lanes
    probs = e * pl.reciprocal(jnp.sum(e, axis=-1, keepdims=True), approx=True)

    # numerically stable softplus; only std lanes are kept by the select.
    # (The packed head is a single 128-lane vreg column, so the full-width
    #  EUP pass is already minimal.)
    sp = jnp.maximum(z, 0.0) + jnp.log1p(jnp.exp(-jnp.abs(z)))

    out = jnp.where(is_mix, probs,
                    jnp.where(is_std, sp,
                              jnp.where(is_mean, z, 0.0)))
    out_ref[...] = out.astype(out_ref.dtype)      # single lane-dense store


def pack_cgmm_params(params, mixture_num, output_dim, *,
                     compute_dtype=jnp.float32):
    """Pad/fuse weights once per parameter set (hoisted out of forward).

    Weights are stored [in, out].  Hidden dim is zero-padded to a multiple of
    128 lanes; the three head weight matrices are packed back-to-back along
    the output axis and the total width padded to a multiple of 128.
    `compute_dtype=jnp.bfloat16` is supported on v5e/v6e/v7x (MXU bf16 inputs,
    f32 accumulation; all VPU/EUP math stays f32).
    """
    in_dim, H = params["w1"].shape
    K, D = mixture_num, output_dim
    KD = K * D
    Hp = _round_up(H, 128)
    Wp = _round_up(K + 2 * KD, 128)

    w1 = jnp.zeros((in_dim, Hp), jnp.float32).at[:, :H].set(params["w1"])
    b1 = jnp.zeros((1, Hp), jnp.float32).at[0, :H].set(params["b1"])
    w2 = jnp.zeros((Hp, Hp), jnp.float32).at[:H, :H].set(params["w2"])
    b2 = jnp.zeros((1, Hp), jnp.float32).at[0, :H].set(params["b2"])

    wh = jnp.zeros((Hp, Wp), jnp.float32)
    wh = wh.at[:H, :K].set(params["wm"])
    wh = wh.at[:H, K:K + KD].set(params["wmu"])
    wh = wh.at[:H, K + KD:K + 2 * KD].set(params["wsd"])
    bh = jnp.zeros((1, Wp), jnp.float32)
    bh = bh.at[0, :K].set(params["bm"])
    bh = bh.at[0, K:K + KD].set(params["bmu"])
    bh = bh.at[0, K + KD:K + 2 * KD].set(params["bsd"])

    return dict(
        w1=w1.astype(compute_dtype), b1=b1,
        w2=w2.astype(compute_dtype), b2=b2,
        wh=wh.astype(compute_dtype), bh=bh,
    )


@functools.partial(
    jax.jit,
    static_argnames=("mixture_num", "output_dim", "block_m", "out_dtype",
                     "single_buffer_weights"))
def cgmm_forward(x, packed, mixture_num, output_dim, *,
                 block_m=1024, out_dtype=jnp.float32,
                 single_buffer_weights=False):
    """CGMM forward pass in a single Pallas kernel.

    Args:
      x: [B, input_dim] float32 (cast to the compute dtype happens in-kernel).
      packed: output of pack_cgmm_params (prepacked, lane-padded weights).
      block_m: max batch tile size per grid step (1024 recommended).
      out_dtype: output storage dtype (jnp.float32 or jnp.bfloat16).
      single_buffer_weights: single-buffer the VMEM-resident weights
        (pl.Buffered(1)); enable on v7x / large hidden dims to halve resident
        weight VMEM.
    Returns:
      probs [B, K], means [B, K, D], stds [B, K, D]  (dtype = out_dtype)
    """
    B, in_dim = x.shape
    Hp = packed["w1"].shape[1]
    Wp = packed["wh"].shape[1]
    K, D = mixture_num, output_dim
    KD = K * D
    assert packed["w1"].shape[0] == in_dim
    assert K + 2 * KD <= Wp

    # --- batch tiling: big tiles, >=2 grid steps when possible (v7x) --------
    sublane = 16                       # satisfies f32 (8) and bf16 (16) tiling
    tm_cap = _round_up(block_m, sublane)
    if B >= 2 * tm_cap:
        TM = tm_cap
    elif B > sublane:
        TM = _round_up(-(-B // 2), sublane)    # ~half the batch -> 2 steps
    else:
        TM = sublane                           # tiny batch: one small step
    Bp = _round_up(B, TM)
    xp = x if Bp == B else jnp.pad(x, ((0, Bp - B), (0, 0)))
    # NOTE: x is intentionally NOT cast to the compute dtype here.

    # --- VMEM budget: actual requirement + headroom, capped v7x-safe --------
    wbytes = jnp.dtype(packed["w1"].dtype).itemsize
    obytes = jnp.dtype(out_dtype).itemsize
    weight_bytes = ((in_dim * Hp + Hp * Hp + Hp * Wp) * wbytes
                    + (2 * Hp + Wp) * 4)
    weight_bufs = 1 if single_buffer_weights else 2
    io_bytes = 2 * TM * (in_dim * 4 + Wp * obytes)     # double-buffered tiles
    tmp_bytes = 8 * TM * max(Hp, Wp) * 4               # h1/h2/z/masks/out
    need = weight_bufs * weight_bytes + io_bytes + tmp_bytes
    vmem_limit = int(min(48 * 1024 * 1024, max(32 * 1024 * 1024, 2 * need)))

    # TODO(synk): for very large H x (K + 2*K*D) head weights (v7x, 64 MiB
    # VMEM) add a second grid axis tiling the fused head width instead of
    # keeping the whole head weight VMEM-resident.

    grid = (Bp // TM,)
    row_map = lambda i: (i, 0)                 # batch-tiled arrays
    const2d = lambda i: (0, 0)                 # weights stay VMEM-resident

    def w_spec(shape):
        if single_buffer_weights:
            return pl.BlockSpec(shape, const2d, pipeline_mode=pl.Buffered(1))
        return pl.BlockSpec(shape, const2d)

    in_specs = [
        pl.BlockSpec((TM, in_dim), row_map),   # x
        w_spec((in_dim, Hp)),                  # w1
        w_spec((1, Hp)),                       # b1
        w_spec((Hp, Hp)),                      # w2
        w_spec((1, Hp)),                       # b2
        w_spec((Hp, Wp)),                      # fused head weight
        w_spec((1, Wp)),                       # fused head bias
    ]
    out_specs = pl.BlockSpec((TM, Wp), row_map)
    out_shape = jax.ShapeDtypeStruct((Bp, Wp), out_dtype)

    fused = pl.pallas_call(
        functools.partial(_cgmm_kernel, k=K, kd=KD),
        grid=grid,
        in_specs=in_specs,
        out_specs=out_specs,
        out_shape=out_shape,
        compiler_params=pltpu.CompilerParams(
            dimension_semantics=("parallel",),
            vmem_limit_bytes=vmem_limit,
        ),
    )(xp, packed["w1"], packed["b1"], packed["w2"], packed["b2"],
      packed["wh"], packed["bh"])

    fused = fused[:B]
    probs = fused[:, :K]
    means = fused[:, K:K + KD].reshape(B, K, D)
    stds = fused[:, K + KD:K + 2 * KD].reshape(B, K, D)
    return probs, means, stds


def init_params(key, input_dim, hidden_dim, mixture_num, output_dim):
    """Deterministic synthetic weights. Linear weights stored as [in, out]."""
    K, D = mixture_num, output_dim
    ks = jax.random.split(key, 10)

    def lin(kw, kb, fan_in, fan_out):
        bound = 1.0 / jnp.sqrt(fan_in)
        w = jax.random.uniform(kw, (fan_in, fan_out), jnp.float32, -bound, bound)
        b = jax.random.uniform(kb, (fan_out,), jnp.float32, -bound, bound)
        return w, b

    w1, b1 = lin(ks[0], ks[1], input_dim, hidden_dim)
    w2, b2 = lin(ks[2], ks[3], hidden_dim, hidden_dim)
    wm, bm = lin(ks[4], ks[5], hidden_dim, K)
    wmu, bmu = lin(ks[6], ks[7], hidden_dim, K * D)
    wsd, bsd = lin(ks[8], ks[9], hidden_dim, K * D)
    return dict(w1=w1, b1=b1, w2=w2, b2=b2, wm=wm, bm=bm,
                wmu=wmu, bmu=bmu, wsd=wsd, bsd=bsd)


def cgmm_reference(x, p, K, D):
    """Pure-JAX reference for correctness checking."""
    h1 = jnp.tanh(x @ p["w1"] + p["b1"])
    h2 = jnp.tanh(h1 @ p["w2"] + p["b2"])
    probs = jax.nn.softmax(h2 @ p["wm"] + p["bm"], axis=-1)
    means = (h2 @ p["wmu"] + p["bmu"]).reshape(x.shape[0], K, D)
    stds = jax.nn.softplus(h2 @ p["wsd"] + p["bsd"]).reshape(x.shape[0], K, D)
    return probs, means, stds


if __name__ == "__main__":
    input_dim, output_dim, hidden_dim, mixture_num = 16, 8, 32, 4
    batch = 8

    key = jax.random.PRNGKey(0)
    k_x, k_p = jax.random.split(key)
    x = jax.random.normal(k_x, (batch, input_dim), jnp.float32)
    params = init_params(k_p, input_dim, hidden_dim, mixture_num, output_dim)

    rp, rm, rs = cgmm_reference(x, params, mixture_num, output_dim)

    # f32 compute, f32 outputs: strict correctness vs pure-JAX reference
    packed_f32 = pack_cgmm_params(params, mixture_num, output_dim)
    probs, means, stds = cgmm_forward(x, packed_f32, mixture_num, output_dim)
    jax.block_until_ready((probs, means, stds))

    assert probs.shape == (batch, mixture_num)
    assert means.shape == (batch, mixture_num, output_dim)
    assert stds.shape == (batch, mixture_num, output_dim)
    # approx reciprocal in the softmax -> 1e-3 tolerance on probs
    assert jnp.allclose(probs, rp, atol=1e-3), "mixture probs mismatch"
    assert jnp.allclose(means, rm, atol=1e-4), "means mismatch"
    assert jnp.allclose(stds, rs, atol=1e-4), "stds mismatch"

    # bf16 compute + bf16 outputs (fast path on v5e / v6e / v7x)
    packed_bf16 = pack_cgmm_params(params, mixture_num, output_dim,
                                   compute_dtype=jnp.bfloat16)
    pb, mb, sb = cgmm_forward(x, packed_bf16, mixture_num, output_dim,
                              out_dtype=jnp.bfloat16)
    jax.block_until_ready((pb, mb, sb))
    assert jnp.allclose(pb.astype(jnp.float32), rp, atol=5e-2, rtol=5e-2), \
        "bf16 probs drift"
    assert jnp.allclose(mb.astype(jnp.float32), rm, atol=5e-2, rtol=5e-2), \
        "bf16 means drift"
    assert jnp.allclose(sb.astype(jnp.float32), rs, atol=5e-2, rtol=5e-2), \
        "bf16 stds drift"

    print("KERNEL_OK")
</pallas_src>

<mosaic_0001>
module attributes {stable_mosaic.version = 11 : i64} {
  func.func @_cgmm_kernel(%arg0: i32, %arg1: memref<16x16xf32, #tpu.memory_space<vmem>>, %arg2: memref<16x128xf32, #tpu.memory_space<vmem>>, %arg3: memref<1x128xf32, #tpu.memory_space<vmem>>, %arg4: memref<128x128xf32, #tpu.memory_space<vmem>>, %arg5: memref<1x128xf32, #tpu.memory_space<vmem>>, %arg6: memref<128x128xf32, #tpu.memory_space<vmem>>, %arg7: memref<1x128xf32, #tpu.memory_space<vmem>>, %arg8: memref<16x128xf32, #tpu.memory_space<vmem>>) attributes {dimension_semantics = [#tpu.dimension_semantics<parallel>], iteration_bounds = array<i64: 1>, scalar_prefetch = 0 : i64, scratch_operands = 0 : i64, tpu.core_type = #tpu.core_type<tc>, window_params = [{transform_indices = @transform_0, window_bounds = array<i64: 16, 16>}, {pipeline_mode = #tpu.pipeline_mode<synchronous>, transform_indices = @transform_1, window_bounds = array<i64: 16, 128>}, {pipeline_mode = #tpu.pipeline_mode<synchronous>, transform_indices = @transform_2, window_bounds = array<i64: 1, 128>}, {pipeline_mode = #tpu.pipeline_mode<synchronous>, transform_indices = @transform_3, window_bounds = array<i64: 128, 128>}, {pipeline_mode = #tpu.pipeline_mode<synchronous>, transform_indices = @transform_4, window_bounds = array<i64: 1, 128>}, {pipeline_mode = #tpu.pipeline_mode<synchronous>, transform_indices = @transform_5, window_bounds = array<i64: 128, 128>}, {pipeline_mode = #tpu.pipeline_mode<synchronous>, transform_indices = @transform_6, window_bounds = array<i64: 1, 128>}, {transform_indices = @transform_7, window_bounds = array<i64: 16, 128>}]} {
    %c0 = arith.constant 0 : index
    %c0_0 = arith.constant 0 : index
    %0 = vector.load %arg1[%c0, %c0_0] : memref<16x16xf32, #tpu.memory_space<vmem>>, vector<16x16xf32>
    %c0_1 = arith.constant 0 : index
    %c0_2 = arith.constant 0 : index
    %1 = vector.load %arg2[%c0_1, %c0_2] : memref<16x128xf32, #tpu.memory_space<vmem>>, vector<16x128xf32>
    %cst = arith.constant dense<0.000000e+00> : vector<16x128xf32>
    %2 = tpu.matmul %0, %1, %cst {dimension_numbers = #tpu.dot_dimension_numbers<[1], [0], [0], [1], [0, 0, 1, 1], [], []>} : vector<16x16xf32>, vector<16x128xf32>, vector<16x128xf32> -> vector<16x128xf32>
    %c0_3 = arith.constant 0 : index
    %c0_4 = arith.constant 0 : index
    %3 = vector.load %arg3[%c0_3, %c0_4] : memref<1x128xf32, #tpu.memory_space<vmem>>, vector<1x128xf32>
    %4 = vector.broadcast %3 : vector<1x128xf32> to vector<16x128xf32>
    %5 = arith.addf %2, %4 : vector<16x128xf32>
    %6 = math.tanh %5 : vector<16x128xf32>
    %c0_5 = arith.constant 0 : index
    %c0_6 = arith.constant 0 : index
    %7 = vector.load %arg4[%c0_5, %c0_6] : memref<128x128xf32, #tpu.memory_space<vmem>>, vector<128x128xf32>
    %cst_7 = arith.constant dense<0.000000e+00> : vector<16x128xf32>
    %8 = tpu.matmul %6, %7, %cst_7 {dimension_numbers = #tpu.dot_dimension_numbers<[1], [0], [0], [1], [0, 0, 1, 1], [], []>} : vector<16x128xf32>, vector<128x128xf32>, vector<16x128xf32> -> vector<16x128xf32>
    %c0_8 = arith.constant 0 : index
    %c0_9 = arith.constant 0 : index
    %9 = vector.load %arg5[%c0_8, %c0_9] : memref<1x128xf32, #tpu.memory_space<vmem>>, vector<1x128xf32>
    %10 = vector.broadcast %9 : vector<1x128xf32> to vector<16x128xf32>
    %11 = arith.addf %8, %10 : vector<16x128xf32>
    %12 = math.tanh %11 : vector<16x128xf32>
    %c0_10 = arith.constant 0 : index
    %c0_11 = arith.constant 0 : index
    %13 = vector.load %arg6[%c0_10, %c0_11] : memref<128x128xf32, #tpu.memory_space<vmem>>, vector<128x128xf32>
    %cst_12 = arith.constant dense<0.000000e+00> : vector<16x128xf32>
    %14 = tpu.matmul %12, %13, %cst_12 {dimension_numbers = #tpu.dot_dimension_numbers<[1], [0], [0], [1], [0, 0, 1, 1], [], []>} : vector<16x128xf32>, vector<128x128xf32>, vector<16x128xf32> -> vector<16x128xf32>
    %c0_13 = arith.constant 0 : index
    %c0_14 = arith.constant 0 : index
    %15 = vector.load %arg7[%c0_13, %c0_14] : memref<1x128xf32, #tpu.memory_space<vmem>>, vector<1x128xf32>
    %16 = vector.broadcast %15 : vector<1x128xf32> to vector<16x128xf32>
    %17 = arith.addf %14, %16 : vector<16x128xf32>
    %18 = tpu.iota {dimensions = array<i32: 1>} : vector<16x128xi32>
    %c4_i32 = arith.constant 4 : i32
    %19 = vector.broadcast %c4_i32 : i32 to vector<16x128xi32>
    %20 = arith.cmpi slt, %18, %19 : vector<16x128xi32>
    %c4_i32_15 = arith.constant 4 : i32
    %21 = vector.broadcast %c4_i32_15 : i32 to vector<16x128xi32>
    %22 = arith.cmpi sge, %18, %21 : vector<16x128xi32>
    %c36_i32 = arith.constant 36 : i32
    %23 = vector.broadcast %c36_i32 : i32 to vector<16x128xi32>
    %24 = arith.cmpi slt, %18, %23 : vector<16x128xi32>
    %25 = arith.andi %22, %24 : vector<16x128xi1>
    %c36_i32_16 = arith.constant 36 : i32
    %26 = vector.broadcast %c36_i32_16 : i32 to vector<16x128xi32>
    %27 = arith.cmpi sge, %18, %26 : vector<16x128xi32>
    %c68_i32 = arith.constant 68 : i32
    %28 = vector.broadcast %c68_i32 : i32 to vector<16x128xi32>
    %29 = arith.cmpi slt, %18, %28 : vector<16x128xi32>
    %30 = arith.andi %27, %29 : vector<16x128xi1>
    %cst_17 = arith.constant 0xFF800000 : f32
    %31 = vector.broadcast %cst_17 : f32 to vector<16x128xf32>
    %32 = arith.select %20, %17, %31 : vector<16x128xi1>, vector<16x128xf32>
    %cst_18 = arith.constant dense<0xFF800000> : vector<16xf32>
    %33 = vector.multi_reduction <maximumf>, %32, %cst_18 [1] : vector<16x128xf32> to vector<16xf32>
    %34 = vector.shape_cast %33 : vector<16xf32> to vector<16x1xf32>
    %35 = vector.broadcast %34 : vector<16x1xf32> to vector<16x128xf32>
    %36 = arith.subf %32, %35 : vector<16x128xf32>
    %37 = math.exp %36 : vector<16x128xf32>
    %cst_19 = arith.constant dense<0.000000e+00> : vector<16xf32>
    %38 = vector.multi_reduction <add>, %37, %cst_19 [1] : vector<16x128xf32> to vector<16xf32>
    %39 = vector.shape_cast %38 : vector<16xf32> to vector<16x1xf32>
    %40 = tpu.reciprocal %39 {approx = true} : vector<16x1xf32> -> vector<16x1xf32>
    %41 = vector.broadcast %40 : vector<16x1xf32> to vector<16x128xf32>
    %42 = arith.mulf %37, %41 : vector<16x128xf32>
    %cst_20 = arith.constant 0.000000e+00 : f32
    %43 = vector.broadcast %cst_20 : f32 to vector<16x128xf32>
    %44 = arith.maximumf %17, %43 : vector<16x128xf32>
    %45 = math.absf %17 : vector<16x128xf32>
    %cst_21 = arith.constant 0.000000e+00 : f32
    %46 = vector.broadcast %cst_21 : f32 to vector<16x128xf32>
    %47 = arith.subf %46, %45 : vector<16x128xf32>
    %48 = math.exp %47 : vector<16x128xf32>
    %49 = math.log1p %48 : vector<16x128xf32>
    %50 = arith.addf %44, %49 : vector<16x128xf32>
    %cst_22 = arith.constant 0.000000e+00 : f32
    %51 = vector.broadcast %cst_22 : f32 to vector<16x128xf32>
    %52 = arith.select %25, %17, %51 : vector<16x128xi1>, vector<16x128xf32>
    %53 = arith.select %30, %50, %52 : vector<16x128xi1>, vector<16x128xf32>
    %54 = arith.select %20, %42, %53 : vector<16x128xi1>, vector<16x128xf32>
    %c0_23 = arith.constant 0 : index
    %c0_24 = arith.constant 0 : index
    %55 = vector.load %arg8[%c0_23, %c0_24] : memref<16x128xf32, #tpu.memory_space<vmem>>, vector<16x128xf32>
    tpu.vector_store %arg8[%c0_23, %c0_24], %54 {strides = array<i32>} : memref<16x128xf32, #tpu.memory_space<vmem>>, vector<16x128xf32>,
    return
  }
  func.func @transform_0(%arg0: i32) -> (i32, i32) {
    %c0_i32 = arith.constant 0 : i32
    %c0_i32_0 = arith.constant 0 : i32
    return %arg0, %c0_i32 : i32, i32
  }
  func.func @transform_1(%arg0: i32) -> (i32, i32) {
    %c0_i32 = arith.constant 0 : i32
    %c0_i32_0 = arith.constant 0 : i32
    %c0_i32_1 = arith.constant 0 : i32
    return %c0_i32, %c0_i32_0 : i32, i32
  }
  func.func @transform_2(%arg0: i32) -> (i32, i32) {
    %c0_i32 = arith.constant 0 : i32
    %c0_i32_0 = arith.constant 0 : i32
    %c0_i32_1 = arith.constant 0 : i32
    return %c0_i32, %c0_i32_0 : i32, i32
  }
  func.func @transform_3(%arg0: i32) -> (i32, i32) {
    %c0_i32 = arith.constant 0 : i32
    %c0_i32_0 = arith.constant 0 : i32
    %c0_i32_1 = arith.constant 0 : i32
    return %c0_i32, %c0_i32_0 : i32, i32
  }
  func.func @transform_4(%arg0: i32) -> (i32, i32) {
    %c0_i32 = arith.constant 0 : i32
    %c0_i32_0 = arith.constant 0 : i32
    %c0_i32_1 = arith.constant 0 : i32
    return %c0_i32, %c0_i32_0 : i32, i32
  }
  func.func @transform_5(%arg0: i32) -> (i32, i32) {
    %c0_i32 = arith.constant 0 : i32
    %c0_i32_0 = arith.constant 0 : i32
    %c0_i32_1 = arith.constant 0 : i32
    return %c0_i32, %c0_i32_0 : i32, i32
  }
  func.func @transform_6(%arg0: i32) -> (i32, i32) {
    %c0_i32 = arith.constant 0 : i32
    %c0_i32_0 = arith.constant 0 : i32
    %c0_i32_1 = arith.constant 0 : i32
    return %c0_i32, %c0_i32_0 : i32, i32
  }
  func.func @transform_7(%arg0: i32) -> (i32, i32) {
    %c0_i32 = arith.constant 0 : i32
    %c0_i32_0 = arith.constant 0 : i32
    return %arg0, %c0_i32 : i32, i32
  }
}

</mosaic_0001>

<bundles_post_ra>
// kernel: cgmm_forward.1
= control target key start
LH: loop header
LB: loop body
LE: loop exit
PB: predicated region body
PF: predicated region fallthrough
CT: control target
= control target key end

     0   :  { %12 = vsyncpa [#allocation3], 0  ;;  %s806_s0 = inlined_call_operand.vmem [shape: f32[16,16], index: 0, kind: input, shape index: {}]   ;;  %s807_s1 = inlined_call_operand.vmem [shape: f32[16,128], index: 1, kind: input, shape index: {}]   ;;  %s808_s2 = inlined_call_operand.vmem [shape: f32[1,128], index: 2, kind: input, shape index: {}]   ;;  %s809_s3 = inlined_call_operand.hbm [shape: f32[128,128], index: 3, kind: input, shape index: {}]   ;;  %s810_s4 = inlined_call_operand.vmem [shape: f32[1,128], index: 4, kind: input, shape index: {}]   ;;  %s811_s5 = inlined_call_operand.hbm [shape: f32[128,128], index: 5, kind: input, shape index: {}]   ;;  %s812_s6 = inlined_call_operand.vmem [shape: f32[1,128], index: 6, kind: input, shape index: {}]   ;;  %s813_s7 = inlined_call_operand.vmem [shape: f32[16,128], index: 7, kind: output, shape index: {}]  }
   0x1   :  { %13 = vsyncpa [#allocation5], 0  ;;  %s686_s24 = smov [#allocation2]   ;;  %s638_s28 = scalar_lea.hbm %s809_s3, 2048 }
   0x2   :  { %s25_s25 = sshll.u32 %s686_s24, 4  ;;  %p639_p0 = scmp.ne.s32.totalorder %s809_s3, %s638_s28  ;;  %s26_s25 = int_to_ptr.vmem [resolvable:$true] %s25_s25 }
   0x3   :  { %p642_p1 = scmp.lt.u32.totalorder %s638_s28, %s809_s3 }
   0x5   :  { %p644_p2 = pnand %p642_p1, %p639_p0 }
   0x7   :  { %647 = shalt.err (!%p644_p2)
}
   0x8   :  { %s648_s10 = scalar_lea.vmem %s26_s25, 2048  ;;  %p653_p4 = scmp.lt.s32.totalorder %s26_s25, %s26_s25 }
   0x9   :  { %p649_p3 = scmp.ne.s32.totalorder %s26_s25, %s648_s10  ;;  %p654_p5 = scmp.lt.s32.totalorder %s648_s10, %s648_s10 }
   0xb   :  { %p655_p6 = por %p654_p5, %p653_p4 }
   0xd   :  { %p656_p7 = pnand %p655_p6, %p649_p3 }
   0xf   :  { %659 = shalt.err (!%p656_p7)
}
  0x10   :  { %s687_s11 = smov 128   ;;  %s688_s12 = smov 8  }
  0x11   :  { %31 = dma.hbm_to_vmem [thread:$0]  %s809_s3, 2048, %s26_s25, [#allocation3], %s687_s11, %s687_s11, %s688_s12  }
  0x12   :  { %s689_s15 = smov [#allocation4]   ;;  %s660_s19 = scalar_lea.hbm %s811_s5, 2048 }
  0x13   :  { %s39_s16 = sshll.u32 %s689_s15, 4  ;;  %p661_p8 = scmp.ne.s32.totalorder %s811_s5, %s660_s19  ;;  %s40_s16 = int_to_ptr.vmem [resolvable:$true] %s39_s16 }
  0x14   :  { %p664_p9 = scmp.lt.u32.totalorder %s660_s19, %s811_s5 }
  0x16   :  { %p666_p10 = pnand %p664_p9, %p661_p8 }
  0x18   :  { %669 = shalt.err (!%p666_p10)
}
  0x19   :  { %s670_s24 = scalar_lea.vmem %s40_s16, 2048  ;;  %p675_p12 = scmp.lt.s32.totalorder %s40_s16, %s40_s16 }
  0x1a   :  { %p671_p11 = scmp.ne.s32.totalorder %s40_s16, %s670_s24  ;;  %p676_p13 = scmp.lt.s32.totalorder %s670_s24, %s670_s24 }
  0x1c   :  { %p677_p0 = por %p676_p13, %p675_p12 }
  0x1e   :  { %p678_p1 = pnand %p677_p0, %p671_p11 }
  0x20   :  { %681 = shalt.err (!%p678_p1)
}
  0x21   :  { %45 = dma.hbm_to_vmem [thread:$0]  %s811_s5, 2048, %s40_s16, [#allocation5], %s687_s11, %s687_s11, %s688_s12  }
  0x22   :  { %682 = dma.done.wait [#allocation3], 2048  }
  0x23   :  { %683 = vsyncadd [#allocation3], 4294965248 }
  0x24   :  { %684 = dma.done.wait [#allocation5], 2048  }
  0x25   :  { %685 = vsyncadd [#allocation5], 4294965248  ;;  %vm65_vm0 = vcmask 130048   ;;  %v56_v0 = vld [vmem:[%s807_s1] sm:$0xff]  ;;  %v57_v1 = vld [vmem:[%s807_s1 + $0x8] sm:$0xff] }
  0x26   :  { %v54_v2 = vld [vmem:[%s806_s0] sm:$0xff]  ;;  %v542_v3 = vpack.c.bf16 %v57_v1, %v56_v0  ;;  %v150_v5 = vld [vmem:[#allocation2 + $0x8] sm:$0xff]  ;;  %v151_v7 = vld [vmem:[#allocation2 + $0x10] sm:$0xff] }
  0x27   :  { %469 = vmatprep.mubr.msk.f32.mxu0 %vm65_vm0, %v54_v2  ;;  %v149_v4 = vld [vmem:[#allocation2] sm:$0xff]  ;;  %v152_v8 = vld [vmem:[#allocation2 + $0x18] sm:$0xff]  ;;  %v154_v11 = vld [vmem:[#allocation2 + $0x28] sm:$0xff] }
  0x28   :  { %v546_v6 = vpack.c.bf16 %v150_v5, %v149_v4  ;;  %543 = vmatprep.subr.bf16.mxu0 %v542_v3  ;;  %v550_v9 = vpack.c.bf16 %v152_v8, %v151_v7  ;;  %v153_v10 = vld [vmem:[#allocation2 + $0x20] sm:$0xff]  ;;  %v55_v12 = vld [vmem:[%s806_s0 + $0x8] sm:$0xff]  ;;  %v155_v14 = vld [vmem:[#allocation2 + $0x30] sm:$0xff] }
  0x29   :  { %545 = vmatpush3.bf16.msra.mxu0 %v542_v3  ;;  %v554_v13 = vpack.c.bf16 %v154_v11, %v153_v10  ;;  %v156_v15 = vld [vmem:[#allocation2 + $0x38] sm:$0xff]  ;;  %v157_v17 = vld [vmem:[#allocation2 + $0x40] sm:$0xff]  ;;  %v158_v18 = vld [vmem:[#allocation2 + $0x48] sm:$0xff]  ;;  %v347_v3 = vlaneseq }
  0x2a   :  { %547 = vmatprep.subr.bf16.mxu1 %v546_v6  ;;  %v558_v16 = vpack.c.bf16 %v156_v15, %v155_v14  ;;  %v562_v19 = vpack.c.bf16 %v158_v18, %v157_v17  ;;  %v159_v20 = vld [vmem:[#allocation2 + $0x50] sm:$0xff]  ;;  %v160_v21 = vld [vmem:[#allocation2 + $0x58] sm:$0xff]  ;;  %v161_v23 = vld [vmem:[#allocation2 + $0x60] sm:$0xff] }
  0x2b   :  { %549 = vmatpush3.bf16.msra.mxu1 %v546_v6  ;;  %v566_v22 = vpack.c.bf16 %v160_v21, %v159_v20  ;;  %v162_v24 = vld [vmem:[#allocation2 + $0x68] sm:$0xff]  ;;  %v163_v25 = vld [vmem:[#allocation2 + $0x70] sm:$0xff]  ;;  %v164_v27 = vld [vmem:[#allocation2 + $0x78] sm:$0xff]  ;;  %v774_v4 = vand.u32 127, %v347_v3 }
  0x2c   :  { %551 = vmatprep.subr.bf16.mxu1 %v550_v9  ;;  %470 = vmatmul.mubr.msk.f32.vlgmr.msra.gmra.mrb[0].mxu0 %vm65_vm0, %v55_v12  ;;  %v570_v26 = vpack.c.bf16 %v162_v24, %v161_v23  ;;  %v574_v28 = vpack.c.bf16 %v164_v27, %v163_v25  ;;  %v249_v29 = vld [vmem:[#allocation4] sm:$0xff]  ;;  %v250_v30 = vld [vmem:[#allocation4 + $0x8] sm:$0xff]  ;;  %v251_v31 = vld [vmem:[#allocation4 + $0x10] sm:$0xff] }
  0x2d   :  { %v578_v32 = vpack.c.bf16 %v250_v30, %v249_v29  ;;  %v252_v33 = vld [vmem:[#allocation4 + $0x18] sm:$0xff]  ;;  %v253_v35 = vld [vmem:[#allocation4 + $0x20] sm:$0xff]  ;;  %v254_v36 = vld [vmem:[#allocation4 + $0x28] sm:$0xff]  ;;  %vm350_vm1 = vcmp.ge.s32.totalorder %v774_v4, 4  ;;  %vm351_vm2 = vcmp.lt.s32.totalorder %v774_v4, 36  ;;  %vm349_vm4 = vcmp.lt.s32.totalorder %v774_v4, 4 }
  0x2e   :  { %v582_v34 = vpack.c.bf16 %v252_v33, %v251_v31  ;;  %v586_v37 = vpack.c.bf16 %v254_v36, %v253_v35  ;;  %v255_v38 = vld [vmem:[#allocation4 + $0x30] sm:$0xff]  ;;  %v256_v39 = vld [vmem:[#allocation4 + $0x38] sm:$0xff]  ;;  %v420_v41 = vld [vmem:[%s808_s2] ss:$0 sm:$0xff]  ;;  %vm353_vm5 = vcmp.ge.s32.totalorder %v774_v4, 36  ;;  %vm354_vm6 = vcmp.lt.s32.totalorder %v774_v4, 68 }
  0x2f   :  { %553 = vmatpush3.bf16.msra.mxu1 %v550_v9  ;;  %579 = vmatprep.subr.bf16.mxu0 %v578_v32  ;;  %v590_v40 = vpack.c.bf16 %v256_v39, %v255_v38  ;;  %v257_v48 = vld [vmem:[#allocation4 + $0x40] sm:$0xff]  ;;  %v258_v49 = vld [vmem:[#allocation4 + $0x48] sm:$0xff]  ;;  %v259_v51 = vld [vmem:[#allocation4 + $0x50] sm:$0xff] }
  0x30   :  { %555 = vmatprep.subr.bf16.mxu1 %v554_v13  ;;  %581 = vmatpush3.bf16.msra.mxu0 %v578_v32  ;;  %v594_v50 = vpack.c.bf16 %v258_v49, %v257_v48  ;;  %v260_v52 = vld [vmem:[#allocation4 + $0x58] sm:$0xff]  ;;  %v261_v54 = vld [vmem:[#allocation4 + $0x60] sm:$0xff]  ;;  %v262_v55 = vld [vmem:[#allocation4 + $0x68] sm:$0xff] }
  0x31   :  { %583 = vmatprep.subr.bf16.mxu0 %v582_v34  ;;  %v598_v53 = vpack.c.bf16 %v260_v52, %v259_v51  ;;  %v263_v56 = vld [vmem:[#allocation4 + $0x70] sm:$0xff]  ;;  %v602_v57 = vpack.c.bf16 %v262_v55, %v261_v54  ;;  %v264_v58 = vld [vmem:[#allocation4 + $0x78] sm:$0xff]  ;;  %v423_v60 = vld [vmem:[%s810_s4] ss:$0 sm:$0xff] }
  0x32   :  { %v606_v59 = vpack.c.bf16 %v264_v58, %v263_v56  ;;  %v424_v5 = vld [vmem:[%s812_s6] ss:$0 sm:$0xff]  ;;  %vm781_vm3 = vmand %vm350_vm1, %vm351_vm2 }
  0x33   :  { %557 = vmatpush3.bf16.msra.mxu1 %v554_v13  ;;  %vm355_vm8 = vmand %vm353_vm5, %vm354_vm6 }
  0x34   :  { %559 = vmatprep.subr.bf16.mxu1 %v558_v16  ;;  %585 = vmatpush3.bf16.msra.mxu0 %v582_v34 }
  0x35   :  { %587 = vmatprep.subr.bf16.mxu0 %v586_v37 }
  0x37   :  { %561 = vmatpush3.bf16.msra.mxu1 %v558_v16 }
  0x38   :  { %563 = vmatprep.subr.bf16.mxu1 %v562_v19  ;;  %589 = vmatpush3.bf16.msra.mxu0 %v586_v37 }
  0x39   :  { %591 = vmatprep.subr.bf16.mxu0 %v590_v40 }
  0x3b   :  { %565 = vmatpush3.bf16.msra.mxu1 %v562_v19 }
  0x3c   :  { %567 = vmatprep.subr.bf16.mxu1 %v566_v22  ;;  %593 = vmatpush3.bf16.msra.mxu0 %v590_v40 }
  0x3d   :  { %595 = vmatprep.subr.bf16.mxu0 %v594_v50 }
  0x3f   :  { %569 = vmatpush3.bf16.msra.mxu1 %v566_v22 }
  0x40   :  { %571 = vmatprep.subr.bf16.mxu1 %v570_v26  ;;  %597 = vmatpush3.bf16.msra.mxu0 %v594_v50 }
  0x41   :  { %599 = vmatprep.subr.bf16.mxu0 %v598_v53 }
  0x43   :  { %573 = vmatpush3.bf16.msra.mxu1 %v570_v26 }
  0x44   :  { %575 = vmatprep.subr.bf16.mxu1 %v574_v28  ;;  %601 = vmatpush3.bf16.msra.mxu0 %v598_v53 }
  0x45   :  { %603 = vmatprep.subr.bf16.mxu0 %v602_v57 }
  0x47   :  { %577 = vmatpush3.bf16.msra.mxu1 %v574_v28 }
  0x48   :  { %605 = vmatpush3.bf16.msra.mxu0 %v602_v57 }
  0x49   :  { %607 = vmatprep.subr.bf16.mxu0 %v606_v59 }
  0x4c   :  { %609 = vmatpush3.bf16.msra.mxu0 %v606_v59 }
  0xff   :  { %v471_v42 = vpop.f32.mrb[0].mxu0 }
 0x100   :  { %v144_v43 = vadd.f32 %v471_v42, %v420_v41  ;;  %v138_v44 = vpop.f32.mrb[1].mxu0 }
 0x101   :  { %v139_v45 = vadd.f32 %v420_v41, %v138_v44 }
 0x103   :  { %614 = vtanh.f32 %v139_v45 }
 0x104   :  { %616 = vtanh.f32 %v144_v43 }
 0x10d   :  { %v615_v46 = vpop.eup %614 }
 0x10e   :  { %v617_v47 = vpop.eup %616  ;;  %504 = vmatprep.mubr.f32.mxu1 %v615_v46 }
 0x10f   :  { %505 = vmatmul.mubr.f32.vlgmr.msra.gmra.mrb[0].mxu1 %v617_v47 }
 0x1e2   :  { %v506_v61 = vpop.f32.mrb[0].mxu1 }
 0x1e3   :  { %v244_v62 = vadd.f32 %v506_v61, %v423_v60  ;;  %v238_v63 = vpop.f32.mrb[1].mxu1 }
 0x1e4   :  { %v239_v0 = vadd.f32 %v423_v60, %v238_v63 }
 0x1e6   :  { %618 = vtanh.f32 %v239_v0 }
 0x1e7   :  { %620 = vtanh.f32 %v244_v62 }
 0x1f0   :  { %v619_v1 = vpop.eup %618 }
 0x1f1   :  { %v621_v2 = vpop.eup %620  ;;  %539 = vmatprep.mubr.f32.mxu0 %v619_v1 }
 0x1f2   :  { %540 = vmatmul.mubr.f32.vlgmr.msra.gmra.mrb[2].mxu0 %v621_v2 }
 0x2c5   :  { %v541_v6 = vpop.f32.mrb[2].mxu0 }
 0x2c6   :  { %v344_v8 = vadd.f32 %v541_v6, %v424_v5  ;;  %v338_v9 = vpop.f32.mrb[3].mxu0 }
 0x2c7   :  { %v339_v10 = vadd.f32 %v424_v5, %v338_v9 }
 0x2c8   :  { %v379_v11 = vand.u32 2147483647, %v344_v8  ;;  %v407_v12 = vsel %vm781_vm3, %v344_v8, 0.0  ;;  %v357_v20 = vsel %vm349_vm4, %v344_v8, -inf  ;;  %v377_v35 = vmax.f32 %v344_v8, 0.0 }
 0x2c9   :  { %v378_v13 = vand.u32 2147483647, %v339_v10  ;;  %v406_v14 = vsel %vm781_vm3, %v339_v10, 0.0  ;;  %v356_v15 = vsel %vm349_vm4, %v339_v10, -inf  ;;  %v376_v39 = vmax.f32 %v339_v10, 0.0 }
 0x2ca   :  { %v381_v16 = vsub.f32 0.0, %v379_v11  ;;  %358 = vmax.xlane.f32.xlu0 %v356_v15 }
 0x2cb   :  { %v380_v17 = vsub.f32 0.0, %v378_v13 }
 0x2cc   :  { %v384_v18 = vmul.f32 1.442695, %v381_v16 }
 0x2cd   :  { %v382_v19 = vmul.f32 1.442695, %v380_v17 }
 0x2ce   :  { %622 = vpow2.f32 %v384_v18  ;;  %360 = vmax.xlane.f32.xlu0 %v357_v20 }
 0x2cf   :  { %624 = vpow2.f32 %v382_v19 }
 0x2d8   :  { %v623_v21 = vpop.eup %622 }
 0x2d9   :  { %v625_v22 = vpop.eup %624  ;;  %v395_v23 = vadd.f32 1.0, %v623_v21  ;;  %v398_v25 = vmul.f32 -0.5, %v623_v21  ;;  %v401_v28 = vand.u32 2147483647, %v623_v21 }
 0x2da   :  { %v386_v24 = vadd.f32 1.0, %v625_v22  ;;  %v389_v26 = vmul.f32 -0.5, %v625_v22  ;;  %v392_v30 = vand.u32 2147483647, %v625_v22 }
 0x2db   :  { %626 = vlog2.f32 %v395_v23  ;;  %v399_v27 = vadd.f32 1.0, %v398_v25  ;;  %vm402_vm7 = vcmp.lt.f32.partialorder %v401_v28, 0.0004427343 }
 0x2dc   :  { %628 = vlog2.f32 %v386_v24  ;;  %v390_v29 = vadd.f32 1.0, %v389_v26  ;;  %vm393_vm9 = vcmp.lt.f32.partialorder %v392_v30, 0.0004427343 }
 0x2dd   :  { %v400_v34 = vmul.f32 %v623_v21, %v399_v27 }
 0x2de   :  { %v391_v37 = vmul.f32 %v625_v22, %v390_v29 }
 0x2e5   :  { %v627_v31 = vpop.eup %626 }
 0x2e6   :  { %v629_v32 = vpop.eup %628  ;;  %v397_v33 = vmul.f32 0.6931472, %v627_v31 }
 0x2e7   :  { %v388_v36 = vmul.f32 0.6931472, %v629_v32 }
 0x2e8   :  { %v403_v38 = vsel %vm402_vm7, %v400_v34, %v397_v33 }
 0x2e9   :  { %v405_v40 = vadd.f32 %v403_v38, %v377_v35  ;;  %v394_v41 = vsel %vm393_vm9, %v391_v37, %v388_v36 }
 0x2ea   :  { %v404_v42 = vadd.f32 %v394_v41, %v376_v39 }
 0x2eb   :  { %v409_v43 = vsel %vm355_vm8, %v405_v40, %v407_v12 }
 0x2ec   :  { %v408_v44 = vsel %vm355_vm8, %v404_v42, %v406_v14 }
 0x357   :  { %v359_v45 = vpop.xlane.xlu0 %358 }
 0x358   :  { %v362_v46 = vsub.f32 %v356_v15, %v359_v45 }
 0x35a   :  { %v364_v47 = vmul.f32 1.442695, %v362_v46 }
 0x35b   :  { %v361_v48 = vpop.xlane.xlu0 %360 }
 0x35c   :  { %630 = vpow2.f32 %v364_v47  ;;  %v363_v49 = vsub.f32 %v357_v20, %v361_v48 }
 0x35e   :  { %v366_v50 = vmul.f32 1.442695, %v363_v49 }
 0x360   :  { %632 = vpow2.f32 %v366_v50 }
 0x366   :  { %v631_v51 = vpop.eup %630 }
 0x367   :  { %368 = vadd.xlane.f32.xlu1 %v631_v51 }
 0x36a   :  { %v633_v52 = vpop.eup %632 }
 0x36b   :  { %370 = vadd.xlane.f32.xlu1 %v633_v52 }
 0x3f4   :  { %v369_v53 = vpop.xlane.xlu1 %368 }
 0x3f5   :  { %634 = vrcp.f32 %v369_v53 }
 0x3f8   :  { %v371_v54 = vpop.xlane.xlu1 %370 }
 0x3f9   :  { %636 = vrcp.f32 %v371_v54 }
 0x3ff   :  { %v635_v55 = vpop.eup %634 }
 0x400   :  { %v374_v56 = vmul.f32 %v635_v55, %v631_v51 }
 0x402   :  { %v410_v57 = vsel %vm349_vm4, %v374_v56, %v408_v44 }
 0x403   :  { %v637_v58 = vpop.eup %636  ;;  %412 = vst [vmem:[%s813_s7] sm:$0xff] %v410_v57 }
 0x404   :  { %v375_v59 = vmul.f32 %v637_v58, %v633_v52 }
 0x406   :  { %v411_v60 = vsel %vm349_vm4, %v375_v59, %v409_v43 }
 0x407   :  { %413 = vst [vmem:[%s813_s7 + $0x8] sm:$0xff] %v411_v60 }
 0x408   :  { %418 = vsyncpa [#allocation3], 1 }
 0x409   :  { %419 = vsyncpa [#allocation5], 1 }

</bundles_post_ra>
